<compile_context>
chip_gen: v5e
topology: v5e:2x2
jax: 0.10.0
libtpu: 0.0.40
codegen_flags: <defaults>
</compile_context>

<pallas_src>
import functools
import math

import jax
import jax.numpy as jnp
from jax.experimental import pallas as pl
from jax.experimental.pallas import tpu as pltpu


# ----------------------------------------------------------------------------
# Small helpers
# ----------------------------------------------------------------------------
def _vmem_limit(nbytes):
    """Explicit scoped-VMEM request: footprint + headroom, clamped so the
    request is legal on every generation (v7x physical VMEM is 64 MiB)."""
    return int(min(max(nbytes + (4 << 20), 16 << 20), 64 << 20))


def _m_tile(m):
    """Largest MXU-friendly M tile dividing m, capped at 256 (v5e's 128-wide
    MXU gains nothing from 512, and 512-row f32 tiles overflow its default
    scoped VMEM)."""
    for t in (256, 128, 64, 32, 16, 8):
        if m >= t and m % t == 0:
            return t
    # TODO(synk): pad M instead of falling back to a single full-M block for
    #             large, non-divisible B*S.
    return m


def _q_tile(s):
    for t in (256, 128, 64, 32, 16, 8):
        if s >= t and s % t == 0:
            return t
    return s


# ----------------------------------------------------------------------------
# Kernel 1: fused Q/K/V projections over the flattened (B*S, D) activations
# ----------------------------------------------------------------------------
def _qkv_proj_kernel(xq_ref, xk_ref, xv_ref,
                     wq_ref, wk_ref, wv_ref,
                     bq_ref, bk_ref, bv_ref,
                     q_ref, k_ref, v_ref):
    # x*: (tm, D) f32, w*: (D, D) bf16, b*: (1, D) f32, outputs: (tm, D) bf16.
    for x_ref, w_ref, b_ref, o_ref in (
        (xq_ref, wq_ref, bq_ref, q_ref),
        (xk_ref, wk_ref, bk_ref, k_ref),
        (xv_ref, wv_ref, bv_ref, v_ref),
    ):
        xb = x_ref[...].astype(jnp.bfloat16)
        o_ref[...] = (
            jnp.dot(xb, w_ref[...], preferred_element_type=jnp.float32)
            + b_ref[...]
        ).astype(o_ref.dtype)


def _qkv_proj_shared_kernel(x_ref,
                            wq_ref, wk_ref, wv_ref,
                            bq_ref, bk_ref, bv_ref,
                            q_ref, k_ref, v_ref):
    # Self-attention fast path: one activation DMA reused for all three
    # projections (removes 2/3 of the activation read traffic).
    xb = x_ref[...].astype(jnp.bfloat16)
    for w_ref, b_ref, o_ref in (
        (wq_ref, bq_ref, q_ref),
        (wk_ref, bk_ref, k_ref),
        (wv_ref, bv_ref, v_ref),
    ):
        o_ref[...] = (
            jnp.dot(xb, w_ref[...], preferred_element_type=jnp.float32)
            + b_ref[...]
        ).astype(o_ref.dtype)


def fused_qkv_projection(query, key, value, wq, wk, wv, bq, bk, bv):
    B, S, D = query.shape
    M = B * S
    tm = _m_tile(M)

    shared = (query is key) and (key is value)

    bq = bq.reshape(1, D)
    bk = bk.reshape(1, D)
    bv = bv.reshape(1, D)

    x_spec = pl.BlockSpec((tm, D), lambda i: (i, 0))
    w_spec = pl.BlockSpec((D, D), lambda i: (0, 0))
    b_spec = pl.BlockSpec((1, D), lambda i: (0, 0))
    o_spec = pl.BlockSpec((tm, D), lambda i: (i, 0))

    n_x = 1 if shared else 3
    vmem_bytes = _vmem_limit(
        2 * n_x * tm * D * 4       # f32 activation tiles, double-buffered
        + 2 * 3 * tm * D * 2       # bf16 q/k/v output tiles, double-buffered
        + 2 * 3 * D * D * 2        # bf16 weights (resident)
        + 2 * 3 * D * 4            # f32 biases
    )

    if shared:
        kernel = _qkv_proj_shared_kernel
        in_specs = [x_spec, w_spec, w_spec, w_spec, b_spec, b_spec, b_spec]
        args = (query.reshape(M, D), wq, wk, wv, bq, bk, bv)
    else:
        kernel = _qkv_proj_kernel
        in_specs = [x_spec, x_spec, x_spec,
                    w_spec, w_spec, w_spec,
                    b_spec, b_spec, b_spec]
        args = (query.reshape(M, D), key.reshape(M, D), value.reshape(M, D),
                wq, wk, wv, bq, bk, bv)

    q, k, v = pl.pallas_call(
        kernel,
        out_shape=tuple(
            jax.ShapeDtypeStruct((M, D), jnp.bfloat16) for _ in range(3)
        ),
        grid_spec=pltpu.PrefetchScalarGridSpec(
            num_scalar_prefetch=0,
            grid=(M // tm,),
            in_specs=in_specs,
            out_specs=(o_spec, o_spec, o_spec),
        ),
        compiler_params=pltpu.CompilerParams(
            dimension_semantics=("parallel",),
            vmem_limit_bytes=vmem_bytes),
    )(*args)

    return q.reshape(B, S, D), k.reshape(B, S, D), v.reshape(B, S, D)


# ----------------------------------------------------------------------------
# Kernel 2: attention + fused output projection, grid = (batch, q_tile)
# ----------------------------------------------------------------------------
def _attn_out_kernel(q_ref, k_ref, v_ref, wo_ref, bo_ref, *rest,
                     head, store_attn):
    if store_attn:
        o_ref, attn_ref, acc_ref = rest
    else:
        o_ref, acc_ref = rest
        attn_ref = None

    # Init the (tq, D) f32 accumulator with the output bias (bias add folded).
    acc_ref[...] = jnp.broadcast_to(bo_ref[...], acc_ref.shape)

    # Static head loop; heads are leading-axis indices of the head-major
    # layout, so no lane slicing / relayout inside the kernel.  The output
    # projection accumulates per head -> no concatenate, small live set.
    for h in range(head):
        qh = q_ref[0, h]                       # (tq, d_k) bf16, scale folded
        kh = k_ref[0, h]                       # (S,  d_k) bf16
        vh = v_ref[0, h]                       # (S,  d_k) bf16

        # QK^T without materialising a transpose: contract the last dims.
        scores = jax.lax.dot_general(
            qh, kh, (((1,), (1,)), ((), ())),
            preferred_element_type=jnp.float32)            # (tq, S) f32

        m = jnp.max(scores, axis=-1, keepdims=True)        # stable softmax
        # exp in bf16: scores - m <= 0 and p feeds a bf16 MXU matmul anyway.
        # (Correct on v5e too, just not faster there.)
        p = jnp.exp((scores - m).astype(jnp.bfloat16))     # (tq, S) bf16
        denom = jnp.sum(p.astype(jnp.float32), axis=-1, keepdims=True)
        inv = pl.reciprocal(denom, approx=True)            # EUP slot, not VALU

        # Unnormalised PV matmul, then scale the (tq, d_k) context instead of
        # the (tq, S) probabilities.
        ctx = jnp.dot(p, vh, preferred_element_type=jnp.float32)  # (tq, d_k)
        ctx = ctx * inv

        if attn_ref is not None:
            attn_ref[0, h] = (p.astype(jnp.float32) * inv).astype(attn_ref.dtype)

        # Fused output projection slice for this head: (tq, d_k) @ (d_k, D).
        acc_ref[...] += jnp.dot(ctx.astype(jnp.bfloat16), wo_ref[h],
                                preferred_element_type=jnp.float32)

    o_ref[0] = acc_ref[...].astype(o_ref.dtype)


def attention_with_output_projection(q_hm, k_hm, v_hm, wo_hd, bo, *,
                                     head, return_attn=True):
    B, H, S, d_k = q_hm.shape
    D = H * d_k
    tq = _q_tile(S)
    nq = S // tq

    kernel = functools.partial(_attn_out_kernel, head=head,
                               store_attn=return_attn)

    q_spec = pl.BlockSpec((1, H, tq, d_k), lambda b, t: (b, 0, t, 0))
    # K/V index maps do not depend on the q-tile axis -> resident across it.
    kv_spec = pl.BlockSpec((1, H, S, d_k), lambda b, t: (b, 0, 0, 0))
    wo_spec = pl.BlockSpec((H, d_k, D), lambda b, t: (0, 0, 0))
    bo_spec = pl.BlockSpec((1, D), lambda b, t: (0, 0))

    out_shapes = [jax.ShapeDtypeStruct((B, S, D), jnp.float32)]
    out_specs = [pl.BlockSpec((1, tq, D), lambda b, t: (b, t, 0))]
    if return_attn:
        # Debug path: bf16 probabilities, (1, H, tq, S) per-step block.
        out_shapes.append(jax.ShapeDtypeStruct((B, H, S, S), jnp.bfloat16))
        out_specs.append(pl.BlockSpec((1, H, tq, S), lambda b, t: (b, 0, t, 0)))

    attn_bytes = (2 * H * tq * S * 2) if return_attn else 0
    vmem_bytes = _vmem_limit(
        2 * tq * D * 2            # q block (bf16), double-buffered
        + 2 * 2 * S * D * 2       # k & v blocks (bf16)
        + 2 * D * D * 2           # wo (bf16, resident)
        + 2 * D * 4               # bo
        + 2 * tq * D * 4          # o block (f32), double-buffered
        + attn_bytes              # optional bf16 attn block
        + tq * D * 4              # f32 accumulator scratch
        + 2 * tq * S * 4          # per-head (tq, S) f32 score intermediates
    )

    res = pl.pallas_call(
        kernel,
        out_shape=tuple(out_shapes),
        grid_spec=pltpu.PrefetchScalarGridSpec(
            num_scalar_prefetch=0,
            grid=(B, nq),
            in_specs=[q_spec, kv_spec, kv_spec, wo_spec, bo_spec],
            out_specs=tuple(out_specs),
            scratch_shapes=[pltpu.VMEM((tq, D), jnp.float32)],
        ),
        compiler_params=pltpu.CompilerParams(
            dimension_semantics=("parallel", "parallel"),
            vmem_limit_bytes=vmem_bytes),
    )(q_hm, k_hm, v_hm, wo_hd, bo.reshape(1, D))

    if return_attn:
        return res[0], res[1]
    return res[0], None


# ----------------------------------------------------------------------------
# Module-level forward
# ----------------------------------------------------------------------------
def multi_head_attention(query, key, value, params, head, return_attn=True):
    B, S, D = query.shape
    assert D % head == 0
    d_k = D // head
    scale = 1.0 / math.sqrt(d_k)

    # Fold 1/sqrt(d_k) into the Q projection (one-time D^2 scaling; removes
    # B*S*D per-element multiplies from the hot attention kernel).
    wq = (params["wq"].astype(jnp.float32) * scale).astype(jnp.bfloat16)
    bq = params["bq"] * scale

    q, k, v = fused_qkv_projection(query, key, value,
                                   wq, params["wk"], params["wv"],
                                   bq, params["bk"], params["bv"])

    # Head-major (B, H, S, d_k) bf16 layout for the attention kernel.
    # TODO(synk): fuse this transpose into kernel 1's output path.
    def head_major(x):
        return x.reshape(B, S, head, d_k).transpose(0, 2, 1, 3)

    wo_hd = params["wo"].reshape(head, d_k, D)   # free row-major view of (D, D)

    return attention_with_output_projection(
        head_major(q), head_major(k), head_major(v), wo_hd, params["bo"],
        head=head, return_attn=return_attn)


# ----------------------------------------------------------------------------
# Deterministic parameter init (orthogonal, matching reset_parameters intent)
# ----------------------------------------------------------------------------
def orthogonal_matrix(key, n):
    a = jax.random.normal(key, (n, n), dtype=jnp.float32)
    q, r = jnp.linalg.qr(a)
    return q * jnp.sign(jnp.diagonal(r))[None, :]


def init_params(key, model_dim):
    ks = jax.random.split(key, 4)
    params = {}
    for name, k in zip(("q", "k", "v", "o"), ks):
        # Weights stored in bf16 (MXU dtype); biases kept in f32.
        params[f"w{name}"] = orthogonal_matrix(k, model_dim).astype(jnp.bfloat16)
        params[f"b{name}"] = jnp.zeros((model_dim,), dtype=jnp.float32)
    return params


# ----------------------------------------------------------------------------
# Pure-JAX f32 reference (for correctness check)
# ----------------------------------------------------------------------------
def reference_mha(query, key, value, params, head):
    B, S, D = query.shape
    d_k = D // head

    def lin(x, w, b):
        return x @ w.astype(jnp.float32) + b

    def split(x):
        return x.reshape(B, S, head, d_k).transpose(0, 2, 1, 3)

    q = split(lin(query, params["wq"], params["bq"]))
    k = split(lin(key, params["wk"], params["bk"]))
    v = split(lin(value, params["wv"], params["bv"]))
    scores = jnp.einsum("bhqd,bhkd->bhqk", q, k) / math.sqrt(d_k)
    attn = jax.nn.softmax(scores, axis=-1)
    ctx = jnp.einsum("bhqk,bhkd->bhqd", attn, v)
    ctx = ctx.transpose(0, 2, 1, 3).reshape(B, S, D)
    return lin(ctx, params["wo"], params["bo"]), attn


# ----------------------------------------------------------------------------
if __name__ == "__main__":
    batch, seq, model_dim, head = 2, 8, 32, 4

    key = jax.random.PRNGKey(0)
    k_q, k_k, k_v, k_p = jax.random.split(key, 4)
    query = jax.random.normal(k_q, (batch, seq, model_dim), dtype=jnp.float32)
    key_in = jax.random.normal(k_k, (batch, seq, model_dim), dtype=jnp.float32)
    value = jax.random.normal(k_v, (batch, seq, model_dim), dtype=jnp.float32)
    params = init_params(k_p, model_dim)

    # Cross-attention path, with the (bf16) attention-probability output.
    out, attn = multi_head_attention(query, key_in, value, params, head)
    out = jax.block_until_ready(out)
    attn = jax.block_until_ready(attn)

    # Fast path: context only, no O(S^2) attention writeback.
    out_fast, _ = multi_head_attention(
        query, key_in, value, params, head, return_attn=False)
    out_fast = jax.block_until_ready(out_fast)

    # Self-attention path: exercises the shared-activation projection kernel.
    out_sa, _ = multi_head_attention(
        query, query, query, params, head, return_attn=False)
    out_sa = jax.block_until_ready(out_sa)

    ref_out, ref_attn = reference_mha(query, key_in, value, params, head)
    ref_sa_out, _ = reference_mha(query, query, query, params, head)

    assert out.shape == (batch, seq, model_dim)
    assert attn.shape == (batch, head, seq, seq)
    # Tolerances account for bf16 activation/probability rounding (MXU inputs,
    # bf16 exp, bf16 intermediate storage); accumulation stays f32.
    assert jnp.allclose(out, ref_out, atol=5e-2, rtol=5e-2)
    assert jnp.allclose(attn.astype(jnp.float32), ref_attn, atol=4e-2, rtol=5e-2)
    assert jnp.allclose(out_fast, out, atol=1e-6, rtol=1e-6)
    assert jnp.allclose(out_sa, ref_sa_out, atol=5e-2, rtol=5e-2)

    print("KERNEL_OK")
</pallas_src>

<mosaic_0001>
module attributes {stable_mosaic.version = 11 : i64} {
  func.func @_qkv_proj_kernel(%arg0: i32, %arg1: memref<16x32xf32, #tpu.memory_space<vmem>>, %arg2: memref<16x32xf32, #tpu.memory_space<vmem>>, %arg3: memref<16x32xf32, #tpu.memory_space<vmem>>, %arg4: memref<32x32xbf16, #tpu.memory_space<vmem>>, %arg5: memref<32x32xbf16, #tpu.memory_space<vmem>>, %arg6: memref<32x32xbf16, #tpu.memory_space<vmem>>, %arg7: memref<1x32xf32, #tpu.memory_space<vmem>>, %arg8: memref<1x32xf32, #tpu.memory_space<vmem>>, %arg9: memref<1x32xf32, #tpu.memory_space<vmem>>, %arg10: memref<16x32xbf16, #tpu.memory_space<vmem>>, %arg11: memref<16x32xbf16, #tpu.memory_space<vmem>>, %arg12: memref<16x32xbf16, #tpu.memory_space<vmem>>) attributes {dimension_semantics = [#tpu.dimension_semantics<parallel>], iteration_bounds = array<i64: 1>, scalar_prefetch = 0 : i64, scratch_operands = 0 : i64, tpu.core_type = #tpu.core_type<tc>, window_params = [{transform_indices = @transform_0, window_bounds = array<i64: 16, 32>}, {transform_indices = @transform_1, window_bounds = array<i64: 16, 32>}, {transform_indices = @transform_2, window_bounds = array<i64: 16, 32>}, {pipeline_mode = #tpu.pipeline_mode<synchronous>, transform_indices = @transform_3, window_bounds = array<i64: 32, 32>}, {pipeline_mode = #tpu.pipeline_mode<synchronous>, transform_indices = @transform_4, window_bounds = array<i64: 32, 32>}, {pipeline_mode = #tpu.pipeline_mode<synchronous>, transform_indices = @transform_5, window_bounds = array<i64: 32, 32>}, {pipeline_mode = #tpu.pipeline_mode<synchronous>, transform_indices = @transform_6, window_bounds = array<i64: 1, 32>}, {pipeline_mode = #tpu.pipeline_mode<synchronous>, transform_indices = @transform_7, window_bounds = array<i64: 1, 32>}, {pipeline_mode = #tpu.pipeline_mode<synchronous>, transform_indices = @transform_8, window_bounds = array<i64: 1, 32>}, {transform_indices = @transform_9, window_bounds = array<i64: 16, 32>}, {transform_indices = @transform_10, window_bounds = array<i64: 16, 32>}, {transform_indices = @transform_11, window_bounds = array<i64: 16, 32>}]} {
    %c0 = arith.constant 0 : index
    %c0_0 = arith.constant 0 : index
    %0 = vector.load %arg1[%c0, %c0_0] : memref<16x32xf32, #tpu.memory_space<vmem>>, vector<16x32xf32>
    %1 = arith.truncf %0 : vector<16x32xf32> to vector<16x32xbf16>
    %c0_1 = arith.constant 0 : index
    %c0_2 = arith.constant 0 : index
    %2 = vector.load %arg4[%c0_1, %c0_2] : memref<32x32xbf16, #tpu.memory_space<vmem>>, vector<32x32xbf16>
    %cst = arith.constant dense<0.000000e+00> : vector<16x32xf32>
    %3 = tpu.matmul %1, %2, %cst {dimension_numbers = #tpu.dot_dimension_numbers<[1], [0], [0], [1], [0, 0, 1, 1], [], []>} : vector<16x32xbf16>, vector<32x32xbf16>, vector<16x32xf32> -> vector<16x32xf32>
    %c0_3 = arith.constant 0 : index
    %c0_4 = arith.constant 0 : index
    %4 = vector.load %arg7[%c0_3, %c0_4] : memref<1x32xf32, #tpu.memory_space<vmem>>, vector<1x32xf32>
    %5 = vector.broadcast %4 : vector<1x32xf32> to vector<16x32xf32>
    %6 = arith.addf %3, %5 : vector<16x32xf32>
    %7 = arith.truncf %6 : vector<16x32xf32> to vector<16x32xbf16>
    %c0_5 = arith.constant 0 : index
    %c0_6 = arith.constant 0 : index
    %8 = vector.load %arg10[%c0_5, %c0_6] : memref<16x32xbf16, #tpu.memory_space<vmem>>, vector<16x32xbf16>
    tpu.vector_store %arg10[%c0_5, %c0_6], %7 {strides = array<i32>} : memref<16x32xbf16, #tpu.memory_space<vmem>>, vector<16x32xbf16>,
    %c0_7 = arith.constant 0 : index
    %c0_8 = arith.constant 0 : index
    %9 = vector.load %arg2[%c0_7, %c0_8] : memref<16x32xf32, #tpu.memory_space<vmem>>, vector<16x32xf32>
    %10 = arith.truncf %9 : vector<16x32xf32> to vector<16x32xbf16>
    %c0_9 = arith.constant 0 : index
    %c0_10 = arith.constant 0 : index
    %11 = vector.load %arg5[%c0_9, %c0_10] : memref<32x32xbf16, #tpu.memory_space<vmem>>, vector<32x32xbf16>
    %cst_11 = arith.constant dense<0.000000e+00> : vector<16x32xf32>
    %12 = tpu.matmul %10, %11, %cst_11 {dimension_numbers = #tpu.dot_dimension_numbers<[1], [0], [0], [1], [0, 0, 1, 1], [], []>} : vector<16x32xbf16>, vector<32x32xbf16>, vector<16x32xf32> -> vector<16x32xf32>
    %c0_12 = arith.constant 0 : index
    %c0_13 = arith.constant 0 : index
    %13 = vector.load %arg8[%c0_12, %c0_13] : memref<1x32xf32, #tpu.memory_space<vmem>>, vector<1x32xf32>
    %14 = vector.broadcast %13 : vector<1x32xf32> to vector<16x32xf32>
    %15 = arith.addf %12, %14 : vector<16x32xf32>
    %16 = arith.truncf %15 : vector<16x32xf32> to vector<16x32xbf16>
    %c0_14 = arith.constant 0 : index
    %c0_15 = arith.constant 0 : index
    %17 = vector.load %arg11[%c0_14, %c0_15] : memref<16x32xbf16, #tpu.memory_space<vmem>>, vector<16x32xbf16>
    tpu.vector_store %arg11[%c0_14, %c0_15], %16 {strides = array<i32>} : memref<16x32xbf16, #tpu.memory_space<vmem>>, vector<16x32xbf16>,
    %c0_16 = arith.constant 0 : index
    %c0_17 = arith.constant 0 : index
    %18 = vector.load %arg3[%c0_16, %c0_17] : memref<16x32xf32, #tpu.memory_space<vmem>>, vector<16x32xf32>
    %19 = arith.truncf %18 : vector<16x32xf32> to vector<16x32xbf16>
    %c0_18 = arith.constant 0 : index
    %c0_19 = arith.constant 0 : index
    %20 = vector.load %arg6[%c0_18, %c0_19] : memref<32x32xbf16, #tpu.memory_space<vmem>>, vector<32x32xbf16>
    %cst_20 = arith.constant dense<0.000000e+00> : vector<16x32xf32>
    %21 = tpu.matmul %19, %20, %cst_20 {dimension_numbers = #tpu.dot_dimension_numbers<[1], [0], [0], [1], [0, 0, 1, 1], [], []>} : vector<16x32xbf16>, vector<32x32xbf16>, vector<16x32xf32> -> vector<16x32xf32>
    %c0_21 = arith.constant 0 : index
    %c0_22 = arith.constant 0 : index
    %22 = vector.load %arg9[%c0_21, %c0_22] : memref<1x32xf32, #tpu.memory_space<vmem>>, vector<1x32xf32>
    %23 = vector.broadcast %22 : vector<1x32xf32> to vector<16x32xf32>
    %24 = arith.addf %21, %23 : vector<16x32xf32>
    %25 = arith.truncf %24 : vector<16x32xf32> to vector<16x32xbf16>
    %c0_23 = arith.constant 0 : index
    %c0_24 = arith.constant 0 : index
    %26 = vector.load %arg12[%c0_23, %c0_24] : memref<16x32xbf16, #tpu.memory_space<vmem>>, vector<16x32xbf16>
    tpu.vector_store %arg12[%c0_23, %c0_24], %25 {strides = array<i32>} : memref<16x32xbf16, #tpu.memory_space<vmem>>, vector<16x32xbf16>,
    return
  }
  func.func @transform_0(%arg0: i32) -> (i32, i32) {
    %c0_i32 = arith.constant 0 : i32
    %c0_i32_0 = arith.constant 0 : i32
    return %arg0, %c0_i32 : i32, i32
  }
  func.func @transform_1(%arg0: i32) -> (i32, i32) {
    %c0_i32 = arith.constant 0 : i32
    %c0_i32_0 = arith.constant 0 : i32
    return %arg0, %c0_i32 : i32, i32
  }
  func.func @transform_2(%arg0: i32) -> (i32, i32) {
    %c0_i32 = arith.constant 0 : i32
    %c0_i32_0 = arith.constant 0 : i32
    return %arg0, %c0_i32 : i32, i32
  }
  func.func @transform_3(%arg0: i32) -> (i32, i32) {
    %c0_i32 = arith.constant 0 : i32
    %c0_i32_0 = arith.constant 0 : i32
    %c0_i32_1 = arith.constant 0 : i32
    return %c0_i32, %c0_i32_0 : i32, i32
  }
  func.func @transform_4(%arg0: i32) -> (i32, i32) {
    %c0_i32 = arith.constant 0 : i32
    %c0_i32_0 = arith.constant 0 : i32
    %c0_i32_1 = arith.constant 0 : i32
    return %c0_i32, %c0_i32_0 : i32, i32
  }
  func.func @transform_5(%arg0: i32) -> (i32, i32) {
    %c0_i32 = arith.constant 0 : i32
    %c0_i32_0 = arith.constant 0 : i32
    %c0_i32_1 = arith.constant 0 : i32
    return %c0_i32, %c0_i32_0 : i32, i32
  }
  func.func @transform_6(%arg0: i32) -> (i32, i32) {
    %c0_i32 = arith.constant 0 : i32
    %c0_i32_0 = arith.constant 0 : i32
    %c0_i32_1 = arith.constant 0 : i32
    return %c0_i32, %c0_i32_0 : i32, i32
  }
  func.func @transform_7(%arg0: i32) -> (i32, i32) {
    %c0_i32 = arith.constant 0 : i32
    %c0_i32_0 = arith.constant 0 : i32
    %c0_i32_1 = arith.constant 0 : i32
    return %c0_i32, %c0_i32_0 : i32, i32
  }
  func.func @transform_8(%arg0: i32) -> (i32, i32) {
    %c0_i32 = arith.constant 0 : i32
    %c0_i32_0 = arith.constant 0 : i32
    %c0_i32_1 = arith.constant 0 : i32
    return %c0_i32, %c0_i32_0 : i32, i32
  }
  func.func @transform_9(%arg0: i32) -> (i32, i32) {
    %c0_i32 = arith.constant 0 : i32
    %c0_i32_0 = arith.constant 0 : i32
    return %arg0, %c0_i32 : i32, i32
  }
  func.func @transform_10(%arg0: i32) -> (i32, i32) {
    %c0_i32 = arith.constant 0 : i32
    %c0_i32_0 = arith.constant 0 : i32
    return %arg0, %c0_i32 : i32, i32
  }
  func.func @transform_11(%arg0: i32) -> (i32, i32) {
    %c0_i32 = arith.constant 0 : i32
    %c0_i32_0 = arith.constant 0 : i32
    return %arg0, %c0_i32 : i32, i32
  }
}

</mosaic_0001>

<bundles_post_ra>
// kernel: tpu_custom_call.1
= control target key start
LH: loop header
LB: loop body
LE: loop exit
PB: predicated region body
PF: predicated region fallthrough
CT: control target
= control target key end

     0   :  { %17 = vsyncpa [#allocation3], 0  ;;  %s733_s0 = inlined_call_operand.hbm [shape: f32[16,32], index: 0, kind: input, shape index: {}]   ;;  %s734_s1 = inlined_call_operand.hbm [shape: f32[16,32], index: 1, kind: input, shape index: {}]   ;;  %s735_s2 = inlined_call_operand.hbm [shape: f32[16,32], index: 2, kind: input, shape index: {}]   ;;  %s736_s3 = inlined_call_operand.hbm [shape: bf16[32,32], index: 3, kind: input, shape index: {}]   ;;  %s737_s4 = inlined_call_operand.hbm [shape: bf16[32,32], index: 4, kind: input, shape index: {}]   ;;  %s738_s5 = inlined_call_operand.hbm [shape: bf16[32,32], index: 5, kind: input, shape index: {}]   ;;  %s739_s6 = inlined_call_operand.vmem [shape: f32[1,32], index: 6, kind: input, shape index: {}]   ;;  %s740_s7 = inlined_call_operand.vmem [shape: f32[1,32], index: 7, kind: input, shape index: {}]   ;;  %s741_s8 = inlined_call_operand.vmem [shape: f32[1,32], index: 8, kind: input, shape index: {}]   ;;  %s742_s9 = inlined_call_operand.hbm [shape: bf16[16,32], index: 9, kind: output, shape index: {0}]   ;;  %s743_s10 = inlined_call_operand.hbm [shape: bf16[16,32], index: 10, kind: output, shape index: {1}]   ;;  %s744_s11 = inlined_call_operand.hbm [shape: bf16[16,32], index: 11, kind: output, shape index: {2}]  }
   0x1   :  { %18 = vsyncpa [#allocation6], 0 }
   0x2   :  { %19 = vsyncpa [#allocation9], 0 }
   0x3   :  { %20 = vsyncpa [#allocation12], 0 }
   0x4   :  { %21 = vsyncpa [#allocation4], 0 }
   0x5   :  { %22 = vsyncpa [#allocation15], 0  ;;  %s40_s19 = sshll.u32 %s734_s1, 4  ;;  %s600_s20 = smov [#allocation5]   ;;  %s41_s19 = int_to_ptr.hbm [resolvable:$true] %s40_s19 }
   0x6   :  { %s42_s21 = sshll.u32 %s600_s20, 4  ;;  %s66_s24 = sshll.u32 %s736_s3, 4  ;;  %s43_s21 = int_to_ptr.vmem [resolvable:$true] %s42_s21  ;;  %s67_s24 = int_to_ptr.hbm [resolvable:$true] %s66_s24 }
   0x7   :  { %s601_s25 = smov 128   ;;  %s602_s26 = smov 8  }
   0x8   :  { %48 = dma.hbm_to_vmem [thread:$0]  %s41_s19, 256, %s43_s21, [#allocation6], %s601_s25, %s601_s25, %s602_s26  }
   0x9   :  { %s603_s27 = smov [#allocation8]   ;;  %s604_s29 = smov 64  }
   0xa   :  { %s68_s28 = sshll.u32 %s603_s27, 4  ;;  %s605_s30 = smov 4   ;;  %s69_s28 = int_to_ptr.vmem [resolvable:$true] %s68_s28 }
   0xb   :  { %74 = dma.hbm_to_vmem [thread:$0]  %s67_s24, 256, %s69_s28, [#allocation9], %s604_s29, %s604_s29, %s605_s30  }
   0xc   :  { %s27_s13 = sshll.u32 %s733_s0, 4  ;;  %s606_s14 = smov [#allocation2]   ;;  %s28_s13 = int_to_ptr.hbm [resolvable:$true] %s27_s13 }
   0xd   :  { %s29_s3 = sshll.u32 %s606_s14, 4  ;;  %s53_s17 = sshll.u32 %s735_s2, 4  ;;  %s30_s3 = int_to_ptr.vmem [resolvable:$true] %s29_s3  ;;  %s54_s17 = int_to_ptr.hbm [resolvable:$true] %s53_s17 }
   0xe   :  { %35 = dma.hbm_to_vmem [thread:$0]  %s28_s13, 256, %s30_s3, [#allocation3], %s601_s25, %s601_s25, %s602_s26  }
   0xf   :  { %s607_s18 = smov [#allocation7]   ;;  %s79_s22 = sshll.u32 %s737_s4, 4  ;;  %s80_s22 = int_to_ptr.hbm [resolvable:$true] %s79_s22 }
  0x10   :  { %s55_s19 = sshll.u32 %s607_s18, 4  ;;  %s92_s24 = sshll.u32 %s738_s5, 4  ;;  %s56_s19 = int_to_ptr.vmem [resolvable:$true] %s55_s19  ;;  %s93_s24 = int_to_ptr.hbm [resolvable:$true] %s92_s24 }
  0x11   :  { %61 = dma.hbm_to_vmem [thread:$0]  %s54_s17, 256, %s56_s19, [#allocation6], %s601_s25, %s601_s25, %s602_s26  }
  0x12   :  { %s608_s27 = smov [#allocation10]   ;;  %s609_s2 = smov [#allocation11]  }
  0x13   :  { %s81_s28 = sshll.u32 %s608_s27, 4  ;;  %s94_s1 = sshll.u32 %s609_s2, 4  ;;  %s82_s28 = int_to_ptr.vmem [resolvable:$true] %s81_s28  ;;  %s95_s1 = int_to_ptr.vmem [resolvable:$true] %s94_s1 }
  0x14   :  { %87 = dma.hbm_to_vmem [thread:$0]  %s80_s22, 256, %s82_s28, [#allocation9], %s604_s29, %s604_s29, %s605_s30  }
  0x15   :  { %100 = dma.hbm_to_vmem [thread:$0]  %s93_s24, 256, %s95_s1, [#allocation12], %s604_s29, %s604_s29, %s605_s30  }
  0x16   :  { %588 = dma.done.wait [#allocation3], 256  }
  0x17   :  { %589 = vsyncadd [#allocation3], 4294967040 }
  0x18   :  { %590 = dma.done.wait [#allocation6], 512  }
  0x19   :  { %591 = vsyncadd [#allocation6], 4294966784 }
  0x1a   :  { %592 = dma.done.wait [#allocation9], 512  }
  0x1b   :  { %593 = vsyncadd [#allocation9], 4294966784 }
  0x1c   :  { %594 = dma.done.wait [#allocation12], 256  }
  0x1d   :  { %595 = vsyncadd [#allocation12], 4294967040  ;;  %v351_v0 = vld [vmem:[#allocation8 + $0x8] sm:$0xff]  ;;  %v353_v1 = vld [vmem:[#allocation10 + $0x8] sm:$0xff]  ;;  %vm155_vm0 = vcmask 261120   ;;  %vm175_vm1 = vcmask 257024  }
  0x1e   :  { %v355_v2 = vld [vmem:[#allocation11 + $0x8] sm:$0xff]  ;;  %v350_v3 = vld [vmem:[#allocation8] sm:$0xff]  ;;  %v352_v4 = vld [vmem:[#allocation10] sm:$0xff]  ;;  %165 = vmatpush.bf16.msra.mxu0 %v351_v0  ;;  %210 = vmatpush.bf16.msra.mxu1 %v353_v1  ;;  %s272_s15 = sshll.u32 %s742_s9, 4  ;;  %s611_s16 = smov [#allocation14]   ;;  %s273_s15 = int_to_ptr.hbm [resolvable:$true] %s272_s15 }
  0x1f   :  { %v354_v5 = vld [vmem:[#allocation11] sm:$0xff]  ;;  %v132_v6 = vld [vmem:[#allocation2] sm:$0xff]  ;;  %v133_v7 = vld [vmem:[#allocation2 + $0x8] sm:$0xff]  ;;  %254 = vmatpush.bf16.msra.mxu2 %v355_v2  ;;  %s283_s17 = sshll.u32 %s611_s16, 4  ;;  %s285_s19 = sshll.u32 %s743_s10, 4  ;;  %s284_s17 = int_to_ptr.vmem [resolvable:$true] %s283_s17  ;;  %s286_s19 = int_to_ptr.hbm [resolvable:$true] %s285_s19 }
  0x20   :  { %v178_v8 = vld [vmem:[#allocation5] sm:$0xff]  ;;  %v179_v9 = vld [vmem:[#allocation5 + $0x8] sm:$0xff]  ;;  %v222_v10 = vld [vmem:[#allocation7] sm:$0xff]  ;;  %v134_v12 = vpack.c.bf16 %v133_v7, %v132_v6  ;;  %s612_s9 = smov [#allocation16]   ;;  %s298_s0 = sshll.u32 %s744_s11, 4  ;;  %s299_s0 = int_to_ptr.hbm [resolvable:$true] %s298_s0 }
  0x21   :  { %v223_v11 = vld [vmem:[#allocation7 + $0x8] sm:$0xff]  ;;  %v180_v13 = vpack.c.bf16 %v179_v9, %v178_v8  ;;  %v369_v15 = vld [vmem:[%s739_s6] ss:$0 sm:$0xff]  ;;  %s610_s6 = smov [#allocation13]   ;;  %s296_s20 = sshll.u32 %s612_s9, 4  ;;  %s297_s20 = int_to_ptr.vmem [resolvable:$true] %s296_s20 }
  0x22   :  { %166 = vmatpush.bf16.msra.mxu0 %v350_v3  ;;  %211 = vmatpush.bf16.msra.mxu1 %v352_v4  ;;  %v224_v14 = vpack.c.bf16 %v223_v11, %v222_v10  ;;  %v370_v16 = vld [vmem:[%s740_s7] ss:$0 sm:$0xff]  ;;  %s270_s7 = sshll.u32 %s610_s6, 4  ;;  %s271_s7 = int_to_ptr.vmem [resolvable:$true] %s270_s7 }
  0x23   :  { %255 = vmatpush.bf16.msra.mxu2 %v354_v5  ;;  %v371_v23 = vld [vmem:[%s741_s8] ss:$0 sm:$0xff] }
  0x25   :  { %331 = vmatmul.msk.bf16.vlgmr.msra.gmra.mxu0 %vm155_vm0, %v134_v12  ;;  %340 = vmatmul.msk.bf16.vlgmr.msra.gmra.mxu1 %vm155_vm0, %v180_v13 }
  0x26   :  { %349 = vmatmul.msk.bf16.vlgmr.msra.gmra.mxu2 %vm155_vm0, %v224_v14 }
  0xa2   :  { %v168_v17 = vpop.f32.mrf.mxu0  ;;  %v213_v18 = vpop.f32.mrf.mxu1 }
  0xa3   :  { %v169_v19 = vadd.f32 %v369_v15, %v168_v17  ;;  %v214_v20 = vadd.f32 %v370_v16, %v213_v18 }
  0xa5   :  { %v173_v21 = vpack.c.bf16 %v169_v19, %v169_v19  ;;  %v218_v22 = vpack.c.bf16 %v214_v20, %v214_v20 }
  0xa7   :  { %176 = vst.msk [vmem:[#allocation13] sm:$0xf] %vm175_vm1, %v173_v21 }
  0xa8   :  { %220 = vst.msk [vmem:[#allocation14] sm:$0xf] %vm175_vm1, %v218_v22 }
  0xa9   :  { %v257_v24 = vpop.f32.mrf.mxu2 }
  0xaa   :  { %v258_v25 = vadd.f32 %v371_v23, %v257_v24  ;;  %v170_v26 = vpop.f32.mrf.mxu0  ;;  %v215_v27 = vpop.f32.mrf.mxu1 }
  0xab   :  { %v171_v28 = vadd.f32 %v369_v15, %v170_v26  ;;  %v216_v29 = vadd.f32 %v370_v16, %v215_v27 }
  0xac   :  { %v262_v30 = vpack.c.bf16 %v258_v25, %v258_v25 }
  0xad   :  { %v174_v31 = vpack.c.bf16 %v171_v28, %v171_v28  ;;  %v219_v32 = vpack.c.bf16 %v216_v29, %v216_v29 }
  0xae   :  { %264 = vst.msk [vmem:[#allocation16] sm:$0xf] %vm175_vm1, %v262_v30 }
  0xaf   :  { %177 = vst.msk [vmem:[#allocation13 + $0x4] sm:$0xf] %vm175_vm1, %v174_v31 }
  0xb0   :  { %221 = vst.msk [vmem:[#allocation14 + $0x4] sm:$0xf] %vm175_vm1, %v219_v32  ;;  %278 = dma.vmem_to_hbm [thread:$0]  %s271_s7, 128, %s273_s15, [#allocation4], %s604_s29, %s604_s29, %s605_s30  }
  0xb1   :  { %v259_v33 = vpop.f32.mrf.mxu2  ;;  %291 = dma.vmem_to_hbm [thread:$0]  %s284_s17, 128, %s286_s19, [#allocation15], %s604_s29, %s604_s29, %s605_s30  }
  0xb2   :  { %v260_v34 = vadd.f32 %v371_v23, %v259_v33 }
  0xb4   :  { %v263_v35 = vpack.c.bf16 %v260_v34, %v260_v34 }
  0xb6   :  { %265 = vst.msk [vmem:[#allocation16 + $0x4] sm:$0xf] %vm175_vm1, %v263_v35 }
  0xb7   :  { %304 = dma.vmem_to_hbm [thread:$0]  %s297_s20, 128, %s299_s0, [#allocation15], %s604_s29, %s604_s29, %s605_s30  }
  0xb8   :  { %596 = dma.done.wait [#allocation4], 128  }
  0xb9   :  { %597 = vsyncadd [#allocation4], 4294967168 }
  0xba   :  { %598 = dma.done.wait [#allocation15], 256  }
  0xbb   :  { %599 = vsyncadd [#allocation15], 4294967040 }
  0xbc   :  { %317 = vsyncpa [#allocation3], 1 }
  0xbd   :  { %318 = vsyncpa [#allocation6], 1 }
  0xbe   :  { %319 = vsyncpa [#allocation9], 1 }
  0xbf   :  { %320 = vsyncpa [#allocation12], 1 }
  0xc0   :  { %321 = vsyncpa [#allocation4], 1 }
  0xc1   :  { %322 = vsyncpa [#allocation15], 1 }

</bundles_post_ra>
